<compile_context>
chip_gen: v7x
topology: tpu7x:2x2x1
jax: 0.10.0
libtpu: 0.0.40
codegen_flags: <defaults>
</compile_context>

<pallas_src>
import functools

import jax
import jax.numpy as jnp
from jax.experimental import pallas as pl
from jax.experimental.pallas import tpu as pltpu


TILE_ROWS = 512          # row tile (sweet spot 256-1024; VMEM-safe on v7x too)
_VMEM_LIMIT = 32 * 1024 * 1024


def _round_up(n, m):
    return ((n + m - 1) // m) * m


# -----------------------------------------------------------------------------
# In-kernel stateless PRNG (lowbias32-style integer mixer) for dropout p=0.5.
# -----------------------------------------------------------------------------
def _mix_u32(x):
    x = x ^ (x >> 16)
    x = x * jnp.uint32(0x7FEB352D)
    x = x ^ (x >> 15)
    x = x * jnp.uint32(0x846CA68B)
    x = x ^ (x >> 16)
    return x


def _dropout_keep(shape, layer_seed_u32, row_offset_u32):
    """Bernoulli(0.5) keep-mask keyed on (global row, col, layer, seed)."""
    rows = jax.lax.broadcasted_iota(jnp.uint32, shape, 0) + row_offset_u32
    cols = jax.lax.broadcasted_iota(jnp.uint32, shape, 1)
    x = rows * jnp.uint32(0x9E3779B1) + cols * jnp.uint32(0x85EBCA77)
    bits = _mix_u32(x + layer_seed_u32)
    return bits < jnp.uint32(0x80000000)   # full-word threshold, P(keep)=0.5


# -----------------------------------------------------------------------------
# Fused Prenet kernel: (matmul -> relu -> dropout) x num_layers, in VMEM.
# -----------------------------------------------------------------------------
def make_prenet_kernel(num_layers, tile_rows):
    def kernel(seed_ref, x_ref, *refs):
        # seed_ref : SMEM (1,) int32   (scalar prefetch)
        # x_ref    : VMEM (tile_rows, D_in)            f32
        # refs     : num_layers weight refs (D_in_l, D_out_l) bf16, then o_ref
        w_refs = refs[:num_layers]
        o_ref = refs[num_layers]

        base = seed_ref[0].astype(jnp.uint32)
        row_off = (pl.program_id(0) * tile_rows).astype(jnp.uint32)

        h = x_ref[...].astype(jnp.bfloat16)          # bf16 operands for MXU
        for l in range(num_layers):
            # Linear (no bias), f32 accumulation on the MXU.
            y = jnp.dot(h, w_refs[l][...], preferred_element_type=jnp.float32)
            # ReLU (VPU).
            y = jnp.maximum(y, jnp.float32(0.0))
            # Dropout p=0.5 with 1/(1-p)=2 rescale; unique mask per
            # (seed, layer, global row, col).
            layer_seed = _mix_u32(base + jnp.uint32(l + 1) * jnp.uint32(0xB5297A4D))
            keep = _dropout_keep(y.shape, layer_seed, row_off)
            y = jnp.where(keep, y + y, jnp.float32(0.0))
            # Feed next layer in bf16; final layer stays f32 for the store.
            h = y.astype(jnp.bfloat16) if l + 1 < num_layers else y

        o_ref[...] = h.astype(o_ref.dtype)

    return kernel


# -----------------------------------------------------------------------------
# Wrapper: one pallas_call for the whole Prenet, row-tiled grid.
# -----------------------------------------------------------------------------
def _fused_prenet(x2d, weights_bf16, seed_arr):
    n, d_in = x2d.shape
    num_layers = len(weights_bf16)
    d_out = weights_bf16[-1].shape[1]

    # Row tile: multiple of 16 (bf16 sublane packing), padded grid if needed.
    tile = min(TILE_ROWS, _round_up(n, 16))
    n_pad = _round_up(n, tile)
    if n_pad != n:
        x2d = jnp.pad(x2d, ((0, n_pad - n), (0, 0)))
    grid = (n_pad // tile,)

    in_specs = [pl.BlockSpec((tile, d_in), lambda i, seed: (i, 0))]
    for w in weights_bf16:
        di, do = w.shape
        # Weights are tiny: full-block, resident across all grid steps.
        in_specs.append(pl.BlockSpec((di, do), lambda i, seed: (0, 0)))
    out_spec = pl.BlockSpec((tile, d_out), lambda i, seed: (i, 0))

    out = pl.pallas_call(
        make_prenet_kernel(num_layers, tile),
        out_shape=jax.ShapeDtypeStruct((n_pad, d_out), jnp.float32),
        grid_spec=pltpu.PrefetchScalarGridSpec(
            num_scalar_prefetch=1,
            grid=grid,
            in_specs=in_specs,
            out_specs=out_spec,
        ),
        compiler_params=pltpu.CompilerParams(
            dimension_semantics=("parallel",),   # shard row tiles across TCs
            vmem_limit_bytes=_VMEM_LIMIT,
        ),
    )(seed_arr, x2d, *weights_bf16)

    if n_pad != n:
        out = out[:n]
    return out


# -----------------------------------------------------------------------------
# Prenet: parameter construction + forward glue
# -----------------------------------------------------------------------------
def make_prenet_params(key, in_dim, sizes):
    """Xavier-uniform init (gain=1), matching LinearNorm(bias=False).

    Returns list of f32 weights with shape (D_in, D_out) (transposed vs
    nn.Linear).  NOTE: feature dims should be multiples of 128 for lane-dense
    stores / full MXU utilization (true for the real Prenet, e.g. 256)."""
    in_sizes = [in_dim] + list(sizes[:-1])
    weights = []
    for d_in, d_out in zip(in_sizes, sizes):
        key, sub = jax.random.split(key)
        limit = jnp.sqrt(6.0 / (d_in + d_out))
        w = jax.random.uniform(sub, (d_in, d_out), jnp.float32,
                               minval=-limit, maxval=limit)
        weights.append(w)
    return weights


@jax.jit
def prenet_forward(x, weights, seed):
    """x: (..., D_in) f32;  weights: list of (D_in_l, D_out_l) f32;
    seed: traced int32 scalar (fresh dropout mask per distinct seed)."""
    orig_shape = x.shape
    d_in = orig_shape[-1]
    x2d = x.reshape(-1, d_in).astype(jnp.float32)
    weights_bf16 = [w.astype(jnp.bfloat16) for w in weights]
    seed_arr = jnp.reshape(jnp.asarray(seed, jnp.int32), (1,))
    y2d = _fused_prenet(x2d, weights_bf16, seed_arr)
    return y2d.reshape(orig_shape[:-1] + (weights[-1].shape[1],))


if __name__ == "__main__":
    # Small shapes consistent with Prenet usage: (batch, seq, feature),
    # 128-wide features so stores are lane-dense.
    B, T, IN_DIM = 2, 64, 128
    SIZES = [128, 128]                 # Prenet(in_dim=128, sizes=[128, 128])

    key = jax.random.PRNGKey(0)
    key_x, key_w = jax.random.split(key)

    x = jax.random.normal(key_x, (B, T, IN_DIM), dtype=jnp.float32)
    weights = make_prenet_params(key_w, IN_DIM, SIZES)

    out = prenet_forward(x, weights, jnp.int32(1234))
    out = jax.block_until_ready(out)

    assert out.shape == (B, T, SIZES[-1]), out.shape
    assert bool(jnp.all(jnp.isfinite(out)))
    # ReLU + dropout => all outputs are >= 0, a sizeable fraction exactly zero.
    assert bool(jnp.all(out >= 0.0))
    frac_zero = float(jnp.mean(out == 0.0))
    assert 0.40 < frac_zero < 0.95, frac_zero

    # A different seed must give a different dropout mask, with NO recompile
    # (seed is a traced operand, not static).
    out2 = jax.block_until_ready(prenet_forward(x, weights, jnp.int32(999)))
    assert not bool(jnp.array_equal(out, out2))

    print("KERNEL_OK")
</pallas_src>

<mosaic_0001>
module attributes {stable_mosaic.version = 11 : i64} {
  func.func @kernel(%arg0: i32, %arg1: memref<1xi32, #tpu.memory_space<smem>>, %arg2: memref<128x128xf32, #tpu.memory_space<vmem>>, %arg3: memref<128x128xbf16, #tpu.memory_space<vmem>>, %arg4: memref<128x128xbf16, #tpu.memory_space<vmem>>, %arg5: memref<128x128xf32, #tpu.memory_space<vmem>>) attributes {dimension_semantics = [#tpu.dimension_semantics<parallel>], iteration_bounds = array<i64: 1>, scalar_prefetch = 1 : i64, scratch_operands = 0 : i64, tpu.core_type = #tpu.core_type<tc>, window_params = [{transform_indices = @transform_0, window_bounds = array<i64: 128, 128>}, {pipeline_mode = #tpu.pipeline_mode<synchronous>, transform_indices = @transform_1, window_bounds = array<i64: 128, 128>}, {pipeline_mode = #tpu.pipeline_mode<synchronous>, transform_indices = @transform_2, window_bounds = array<i64: 128, 128>}, {transform_indices = @transform_3, window_bounds = array<i64: 128, 128>}]} {
    %c0 = arith.constant 0 : index
    %0 = memref.load %arg1[%c0] : memref<1xi32, #tpu.memory_space<smem>>
    %c128_i32 = arith.constant 128 : i32
    %1 = arith.muli %arg0, %c128_i32 : i32
    %c0_0 = arith.constant 0 : index
    %c0_1 = arith.constant 0 : index
    %2 = vector.load %arg2[%c0_0, %c0_1] : memref<128x128xf32, #tpu.memory_space<vmem>>, vector<128x128xf32>
    %3 = arith.truncf %2 : vector<128x128xf32> to vector<128x128xbf16>
    %c0_2 = arith.constant 0 : index
    %c0_3 = arith.constant 0 : index
    %4 = vector.load %arg3[%c0_2, %c0_3] : memref<128x128xbf16, #tpu.memory_space<vmem>>, vector<128x128xbf16>
    %cst = arith.constant dense<0.000000e+00> : vector<128x128xf32>
    %5 = tpu.matmul %3, %4, %cst {dimension_numbers = #tpu.dot_dimension_numbers<[1], [0], [0], [1], [0, 0, 1, 1], [], []>} : vector<128x128xbf16>, vector<128x128xbf16>, vector<128x128xf32> -> vector<128x128xf32>
    %cst_4 = arith.constant 0.000000e+00 : f32
    %6 = vector.broadcast %cst_4 : f32 to vector<128x128xf32>
    %7 = arith.maximumf %5, %6 : vector<128x128xf32>
    %c1_i32 = arith.constant 1 : i32
    %c-1255572915_i32 = arith.constant -1255572915 : i32
    %8 = arith.muli %c1_i32, %c-1255572915_i32 : i32
    %9 = arith.addi %0, %8 : i32
    %c16_i32 = arith.constant 16 : i32
    %10 = arith.shrui %9, %c16_i32 : i32
    %11 = arith.xori %9, %10 : i32
    %c2146121005_i32 = arith.constant 2146121005 : i32
    %12 = arith.muli %11, %c2146121005_i32 : i32
    %c15_i32 = arith.constant 15 : i32
    %13 = arith.shrui %12, %c15_i32 : i32
    %14 = arith.xori %12, %13 : i32
    %c-2073254261_i32 = arith.constant -2073254261 : i32
    %15 = arith.muli %14, %c-2073254261_i32 : i32
    %c16_i32_5 = arith.constant 16 : i32
    %16 = arith.shrui %15, %c16_i32_5 : i32
    %17 = arith.xori %15, %16 : i32
    %18 = tpu.iota {dimensions = array<i32: 0>} : vector<128x128xi32>
    %19 = vector.broadcast %1 : i32 to vector<128x128xi32>
    %20 = arith.addi %18, %19 : vector<128x128xi32>
    %21 = tpu.iota {dimensions = array<i32: 1>} : vector<128x128xi32>
    %c-1640531535_i32 = arith.constant -1640531535 : i32
    %22 = vector.broadcast %c-1640531535_i32 : i32 to vector<128x128xi32>
    %23 = arith.muli %20, %22 : vector<128x128xi32>
    %c-2048144777_i32 = arith.constant -2048144777 : i32
    %24 = vector.broadcast %c-2048144777_i32 : i32 to vector<128x128xi32>
    %25 = arith.muli %21, %24 : vector<128x128xi32>
    %26 = arith.addi %23, %25 : vector<128x128xi32>
    %27 = vector.broadcast %17 : i32 to vector<128x128xi32>
    %28 = arith.addi %26, %27 : vector<128x128xi32>
    %c16_i32_6 = arith.constant 16 : i32
    %29 = vector.broadcast %c16_i32_6 : i32 to vector<128x128xi32>
    %30 = arith.shrui %28, %29 : vector<128x128xi32>
    %31 = arith.xori %28, %30 : vector<128x128xi32>
    %c2146121005_i32_7 = arith.constant 2146121005 : i32
    %32 = vector.broadcast %c2146121005_i32_7 : i32 to vector<128x128xi32>
    %33 = arith.muli %31, %32 : vector<128x128xi32>
    %c15_i32_8 = arith.constant 15 : i32
    %34 = vector.broadcast %c15_i32_8 : i32 to vector<128x128xi32>
    %35 = arith.shrui %33, %34 : vector<128x128xi32>
    %36 = arith.xori %33, %35 : vector<128x128xi32>
    %c-2073254261_i32_9 = arith.constant -2073254261 : i32
    %37 = vector.broadcast %c-2073254261_i32_9 : i32 to vector<128x128xi32>
    %38 = arith.muli %36, %37 : vector<128x128xi32>
    %c16_i32_10 = arith.constant 16 : i32
    %39 = vector.broadcast %c16_i32_10 : i32 to vector<128x128xi32>
    %40 = arith.shrui %38, %39 : vector<128x128xi32>
    %41 = arith.xori %38, %40 : vector<128x128xi32>
    %c-2147483648_i32 = arith.constant -2147483648 : i32
    %42 = vector.broadcast %c-2147483648_i32 : i32 to vector<128x128xi32>
    %43 = arith.cmpi ult, %41, %42 : vector<128x128xi32>
    %44 = arith.addf %7, %7 : vector<128x128xf32>
    %cst_11 = arith.constant 0.000000e+00 : f32
    %45 = vector.broadcast %cst_11 : f32 to vector<128x128xf32>
    %46 = arith.select %43, %44, %45 : vector<128x128xi1>, vector<128x128xf32>
    %47 = arith.truncf %46 : vector<128x128xf32> to vector<128x128xbf16>
    %c0_12 = arith.constant 0 : index
    %c0_13 = arith.constant 0 : index
    %48 = vector.load %arg4[%c0_12, %c0_13] : memref<128x128xbf16, #tpu.memory_space<vmem>>, vector<128x128xbf16>
    %cst_14 = arith.constant dense<0.000000e+00> : vector<128x128xf32>
    %49 = tpu.matmul %47, %48, %cst_14 {dimension_numbers = #tpu.dot_dimension_numbers<[1], [0], [0], [1], [0, 0, 1, 1], [], []>} : vector<128x128xbf16>, vector<128x128xbf16>, vector<128x128xf32> -> vector<128x128xf32>
    %cst_15 = arith.constant 0.000000e+00 : f32
    %50 = vector.broadcast %cst_15 : f32 to vector<128x128xf32>
    %51 = arith.maximumf %49, %50 : vector<128x128xf32>
    %c2_i32 = arith.constant 2 : i32
    %c-1255572915_i32_16 = arith.constant -1255572915 : i32
    %52 = arith.muli %c2_i32, %c-1255572915_i32_16 : i32
    %53 = arith.addi %0, %52 : i32
    %c16_i32_17 = arith.constant 16 : i32
    %54 = arith.shrui %53, %c16_i32_17 : i32
    %55 = arith.xori %53, %54 : i32
    %c2146121005_i32_18 = arith.constant 2146121005 : i32
    %56 = arith.muli %55, %c2146121005_i32_18 : i32
    %c15_i32_19 = arith.constant 15 : i32
    %57 = arith.shrui %56, %c15_i32_19 : i32
    %58 = arith.xori %56, %57 : i32
    %c-2073254261_i32_20 = arith.constant -2073254261 : i32
    %59 = arith.muli %58, %c-2073254261_i32_20 : i32
    %c16_i32_21 = arith.constant 16 : i32
    %60 = arith.shrui %59, %c16_i32_21 : i32
    %61 = arith.xori %59, %60 : i32
    %62 = tpu.iota {dimensions = array<i32: 0>} : vector<128x128xi32>
    %63 = vector.broadcast %1 : i32 to vector<128x128xi32>
    %64 = arith.addi %62, %63 : vector<128x128xi32>
    %65 = tpu.iota {dimensions = array<i32: 1>} : vector<128x128xi32>
    %c-1640531535_i32_22 = arith.constant -1640531535 : i32
    %66 = vector.broadcast %c-1640531535_i32_22 : i32 to vector<128x128xi32>
    %67 = arith.muli %64, %66 : vector<128x128xi32>
    %c-2048144777_i32_23 = arith.constant -2048144777 : i32
    %68 = vector.broadcast %c-2048144777_i32_23 : i32 to vector<128x128xi32>
    %69 = arith.muli %65, %68 : vector<128x128xi32>
    %70 = arith.addi %67, %69 : vector<128x128xi32>
    %71 = vector.broadcast %61 : i32 to vector<128x128xi32>
    %72 = arith.addi %70, %71 : vector<128x128xi32>
    %c16_i32_24 = arith.constant 16 : i32
    %73 = vector.broadcast %c16_i32_24 : i32 to vector<128x128xi32>
    %74 = arith.shrui %72, %73 : vector<128x128xi32>
    %75 = arith.xori %72, %74 : vector<128x128xi32>
    %c2146121005_i32_25 = arith.constant 2146121005 : i32
    %76 = vector.broadcast %c2146121005_i32_25 : i32 to vector<128x128xi32>
    %77 = arith.muli %75, %76 : vector<128x128xi32>
    %c15_i32_26 = arith.constant 15 : i32
    %78 = vector.broadcast %c15_i32_26 : i32 to vector<128x128xi32>
    %79 = arith.shrui %77, %78 : vector<128x128xi32>
    %80 = arith.xori %77, %79 : vector<128x128xi32>
    %c-2073254261_i32_27 = arith.constant -2073254261 : i32
    %81 = vector.broadcast %c-2073254261_i32_27 : i32 to vector<128x128xi32>
    %82 = arith.muli %80, %81 : vector<128x128xi32>
    %c16_i32_28 = arith.constant 16 : i32
    %83 = vector.broadcast %c16_i32_28 : i32 to vector<128x128xi32>
    %84 = arith.shrui %82, %83 : vector<128x128xi32>
    %85 = arith.xori %82, %84 : vector<128x128xi32>
    %c-2147483648_i32_29 = arith.constant -2147483648 : i32
    %86 = vector.broadcast %c-2147483648_i32_29 : i32 to vector<128x128xi32>
    %87 = arith.cmpi ult, %85, %86 : vector<128x128xi32>
    %88 = arith.addf %51, %51 : vector<128x128xf32>
    %cst_30 = arith.constant 0.000000e+00 : f32
    %89 = vector.broadcast %cst_30 : f32 to vector<128x128xf32>
    %90 = arith.select %87, %88, %89 : vector<128x128xi1>, vector<128x128xf32>
    %c0_31 = arith.constant 0 : index
    %c0_32 = arith.constant 0 : index
    %91 = vector.load %arg5[%c0_31, %c0_32] : memref<128x128xf32, #tpu.memory_space<vmem>>, vector<128x128xf32>
    tpu.vector_store %arg5[%c0_31, %c0_32], %90 {strides = array<i32>} : memref<128x128xf32, #tpu.memory_space<vmem>>, vector<128x128xf32>,
    return
  }
  func.func @transform_0(%arg0: i32, %arg1: memref<1xi32, #tpu.memory_space<smem>>) -> (i32, i32) {
    %c0_i32 = arith.constant 0 : i32
    %c0_i32_0 = arith.constant 0 : i32
    return %arg0, %c0_i32 : i32, i32
  }
  func.func @transform_1(%arg0: i32, %arg1: memref<1xi32, #tpu.memory_space<smem>>) -> (i32, i32) {
    %c0_i32 = arith.constant 0 : i32
    %c0_i32_0 = arith.constant 0 : i32
    %c0_i32_1 = arith.constant 0 : i32
    return %c0_i32, %c0_i32_0 : i32, i32
  }
  func.func @transform_2(%arg0: i32, %arg1: memref<1xi32, #tpu.memory_space<smem>>) -> (i32, i32) {
    %c0_i32 = arith.constant 0 : i32
    %c0_i32_0 = arith.constant 0 : i32
    %c0_i32_1 = arith.constant 0 : i32
    return %c0_i32, %c0_i32_0 : i32, i32
  }
  func.func @transform_3(%arg0: i32, %arg1: memref<1xi32, #tpu.memory_space<smem>>) -> (i32, i32) {
    %c0_i32 = arith.constant 0 : i32
    %c0_i32_0 = arith.constant 0 : i32
    return %arg0, %c0_i32 : i32, i32
  }
}

</mosaic_0001>

<bundles_post_ra>
// kernel: prenet_forward.1
= control target key start
LH: loop header
LB: loop body
LE: loop exit
PB: predicated region body
PF: predicated region fallthrough
CT: control target
= control target key end

     0   :  { %s1427_s0 = inlined_call_operand.<no memory space> [shape: s32[1], index: 0, kind: input, shape index: {}]   ;;  %s1428_s1 = inlined_call_operand.vmem [shape: f32[128,128], index: 1, kind: input, shape index: {}]   ;;  %s1429_s2 = inlined_call_operand.vmem [shape: bf16[128,128], index: 2, kind: input, shape index: {}]   ;;  %s1430_s3 = inlined_call_operand.vmem [shape: bf16[128,128], index: 3, kind: input, shape index: {}]   ;;  %s1431_s4 = inlined_call_operand.hbm [shape: f32[128,128], index: 4, kind: output, shape index: {}]  }
   0x1   :  { %v1050_v0 = vld [vmem:[%s1429_s2] sm:$0xff]   ;;  %v1051_v1 = vld [vmem:[%s1429_s2 + $0x8] sm:$0xff]   ;;  %v1052_v2 = vld [vmem:[%s1429_s2 + $0x10] sm:$0xff]  }
   0x2   :  { %983 = vmatprep.subr.bf16.mxu0 %v1050_v0  ;;  %v1053_v3 = vld [vmem:[%s1429_s2 + $0x18] sm:$0xff]   ;;  %v20_v4 = vld [vmem:[%s1428_s1] sm:$0xff]  ;;  %v21_v5 = vld [vmem:[%s1428_s1 + $0x8] sm:$0xff] }
   0x3   :  { %984 = vmatpush3.bf16.msra.mxu0 %v1050_v0  ;;  %v36_v6 = vpack.c.bf16 %v21_v5, %v20_v4  ;;  %v1054_v7 = vld [vmem:[%s1429_s2 + $0x20] sm:$0xff]   ;;  %v1059_v9 = vld [vmem:[%s1430_s3 + $0x8] sm:$0xff]   ;;  %v1060_v11 = vld [vmem:[%s1430_s3 + $0x10] sm:$0xff]  }
   0x4   :  { %985 = vmatprep.subr.bf16.mxu0 %v1051_v1  ;;  %v1058_v8 = vld [vmem:[%s1430_s3] sm:$0xff]   ;;  %v1055_v10 = vld [vmem:[%s1429_s2 + $0x28] sm:$0xff]   ;;  %v1056_v12 = vld [vmem:[%s1429_s2 + $0x30] sm:$0xff]  }
   0x5   :  { %999 = vmatprep.mubr.bf16.mxu0 %v36_v6  ;;  %1015 = vmatprep.subr.bf16.mxu1 %v1058_v8 }
   0x6   :  { %1016 = vmatpush3.bf16.msra.mxu1 %v1058_v8 }
   0x7   :  { %986 = vmatpush3.bf16.msra.mxu0 %v1051_v1  ;;  %1017 = vmatprep.subr.bf16.mxu1 %v1059_v9 }
   0x8   :  { %987 = vmatprep.subr.bf16.mxu0 %v1052_v2 }
   0xb   :  { %988 = vmatpush3.bf16.msra.mxu0 %v1052_v2 }
   0xc   :  { %989 = vmatprep.subr.bf16.mxu0 %v1053_v3 }
   0xf   :  { %990 = vmatpush3.bf16.msra.mxu0 %v1053_v3 }
  0x10   :  { %991 = vmatprep.subr.bf16.mxu0 %v1054_v7 }
  0x13   :  { %992 = vmatpush3.bf16.msra.mxu0 %v1054_v7 }
  0x14   :  { %993 = vmatprep.subr.bf16.mxu0 %v1055_v10 }
  0x15   :  { %10 = vsyncpa [#allocation5], 0  ;;  %1018 = vmatpush3.bf16.msra.mxu1 %v1059_v9  ;;  %v1061_v13 = vld [vmem:[%s1430_s3 + $0x18] sm:$0xff]   ;;  %v1062_v15 = vld [vmem:[%s1430_s3 + $0x20] sm:$0xff]   ;;  %s221_s27 = sadd.s32 3039394381, %s1427_s0  ;;  %v230_v40 = vlaneseq }
  0x16   :  { %1019 = vmatprep.subr.bf16.mxu1 %v1060_v11  ;;  %v1057_v14 = vld [vmem:[%s1429_s2 + $0x38] sm:$0xff]   ;;  %v22_v16 = vld [vmem:[%s1428_s1 + $0x10] sm:$0xff]  ;;  %v24_v18 = vld [vmem:[%s1428_s1 + $0x20] sm:$0xff]  ;;  %s222_s28 = sshrl.u32 %s221_s27, 16  ;;  %s677_s10 = sadd.s32 1783821466, %s1427_s0 }
  0x17   :  { %994 = vmatpush3.bf16.msra.mxu0 %v1055_v10  ;;  %v23_v17 = vld [vmem:[%s1428_s1 + $0x18] sm:$0xff]  ;;  %v25_v19 = vld [vmem:[%s1428_s1 + $0x28] sm:$0xff]  ;;  %v26_v23 = vld [vmem:[%s1428_s1 + $0x30] sm:$0xff]  ;;  %v1217_v41 = vshrl.u32 %v230_v40, 7  ;;  %v265_v42 = vand.u32 127, %v230_v40  ;;  %s678_s11 = sshrl.u32 %s677_s10, 16 }
  0x18   :  { %995 = vmatprep.subr.bf16.mxu0 %v1056_v12  ;;  %v37_v20 = vpack.c.bf16 %v23_v17, %v22_v16  ;;  %v1063_v21 = vld [vmem:[%s1430_s3 + $0x28] sm:$0xff]   ;;  %v38_v22 = vpack.c.bf16 %v25_v19, %v24_v18  ;;  %v27_v24 = vld [vmem:[%s1428_s1 + $0x38] sm:$0xff]  ;;  %v28_v25 = vld [vmem:[%s1428_s1 + $0x40] sm:$0xff]  ;;  %s679_s12 = sxor.u32 %s678_s11, %s677_s10  ;;  %s1090_s0 = smov [#allocation4]  }
  0x19   :  { %1020 = vmatpush3.bf16.msra.mxu1 %v1060_v11  ;;  %v29_v26 = vld [vmem:[%s1428_s1 + $0x48] sm:$0xff]  ;;  %v39_v27 = vpack.c.bf16 %v27_v24, %v26_v23  ;;  %v30_v29 = vld [vmem:[%s1428_s1 + $0x50] sm:$0xff]  ;;  %v31_v30 = vld [vmem:[%s1428_s1 + $0x58] sm:$0xff]  ;;  %v232_v43 = vadd.s32 8, %v1217_v41  ;;  %v233_v44 = vadd.s32 16, %v1217_v41  ;;  %v234_v45 = vadd.s32 24, %v1217_v41 }
  0x1a   :  { %1021 = vmatprep.subr.bf16.mxu1 %v1061_v13  ;;  %v40_v28 = vpack.c.bf16 %v29_v26, %v28_v25  ;;  %v32_v31 = vld [vmem:[%s1428_s1 + $0x60] sm:$0xff]  ;;  %v33_v32 = vld [vmem:[%s1428_s1 + $0x68] sm:$0xff]  ;;  %v41_v33 = vpack.c.bf16 %v31_v30, %v30_v29  ;;  %v34_v35 = vld [vmem:[%s1428_s1 + $0x70] sm:$0xff]  ;;  %v266_v46 = vmul.u32 2654435761, %v1217_v41  ;;  %v235_v55 = vadd.s32 32, %v1217_v41 }
  0x1b   :  { %996 = vmatpush3.bf16.msra.mxu0 %v1056_v12  ;;  %v42_v34 = vpack.c.bf16 %v33_v32, %v32_v31  ;;  %v35_v36 = vld [vmem:[%s1428_s1 + $0x78] sm:$0xff]  ;;  %v1064_v38 = vld [vmem:[%s1430_s3 + $0x30] sm:$0xff]   ;;  %s223_s1 = sxor.u32 %s222_s28, %s221_s27  ;;  %v1223_v47 = vmul.u32 2246822519, %v265_v42  ;;  %v267_v48 = vmul.u32 2654435761, %v232_v43 }
  0x1c   :  { %997 = vmatprep.subr.bf16.mxu0 %v1057_v14  ;;  %v43_v37 = vpack.c.bf16 %v35_v36, %v34_v35  ;;  %v1065_v39 = vld [vmem:[%s1430_s3 + $0x38] sm:$0xff]   ;;  %s224_s29 = smul.u32 2146121005, %s223_s1  ;;  %v268_v49 = vmul.u32 2654435761, %v233_v44  ;;  %v236_v56 = vadd.s32 40, %v1217_v41 }
  0x1d   :  { %1022 = vmatpush3.bf16.msra.mxu1 %v1061_v13  ;;  %v269_v50 = vmul.u32 2654435761, %v234_v45  ;;  %v1226_v51 = vadd.s32 %v1223_v47, %v266_v46  ;;  %v1229_v52 = vadd.s32 %v1223_v47, %v267_v48  ;;  %v237_v58 = vadd.s32 48, %v1217_v41  ;;  %s680_s13 = smul.u32 2146121005, %s679_s12  ;;  %s900_s19 = sshll.u32 %s1090_s0, 4  ;;  %s901_s19 = int_to_ptr.vmem [resolvable:$true] %s900_s19 }
  0x1e   :  { %1023 = vmatprep.subr.bf16.mxu1 %v1062_v15  ;;  %s225_s30 = sshrl.u32 %s224_s29, 15  ;;  %v1234_v54 = vadd.s32 %v1223_v47, %v268_v49  ;;  %v270_v62 = vmul.u32 2654435761, %v235_v55  ;;  %v271_v63 = vmul.u32 2654435761, %v236_v56  ;;  %v238_v1 = vadd.s32 56, %v1217_v41  ;;  %p1071_p1 = scmp.lt.s32.totalorder %s901_s19, %s901_s19 }
  0x1f   :  { %998 = vmatpush3.bf16.msra.mxu0 %v1057_v14  ;;  %s226_s5 = sxor.u32 %s225_s30, %s224_s29  ;;  %v1239_v57 = vadd.s32 %v1223_v47, %v269_v50  ;;  %v272_v2 = vmul.u32 2654435761, %v237_v58  ;;  %v239_v19 = vadd.s32 64, %v1217_v41  ;;  %v242_v24 = vadd.s32 88, %v1217_v41  ;;  %s681_s14 = sshrl.u32 %s680_s13, 15 }
  0x20   :  { %s227_s6 = smul.u32 2221713035, %s226_s5  ;;  %v1252_v6 = vadd.s32 %v1223_v47, %v270_v62  ;;  %v1255_v7 = vadd.s32 %v1223_v47, %v271_v63  ;;  %v273_v9 = vmul.u32 2654435761, %v238_v1  ;;  %v243_v55 = vadd.s32 96, %v1217_v41  ;;  %s682_s15 = sxor.u32 %s681_s14, %s680_s13 }
  0x21   :  { %1024 = vmatpush3.bf16.msra.mxu1 %v1062_v15  ;;  %v1258_v10 = vadd.s32 %v1223_v47, %v272_v2  ;;  %v274_v31 = vmul.u32 2654435761, %v239_v19  ;;  %v277_v36 = vmul.u32 2654435761, %v242_v24  ;;  %v244_v56 = vadd.s32 104, %v1217_v41  ;;  %s1066_s20 = scalar_lea.vmem %s901_s19, 2048 }
  0x22   :  { %1000 = vmatmul.mubr.bf16.vlgmr.msra.gmra.mrb[0].mxu0 %v37_v20  ;;  %1025 = vmatprep.subr.bf16.mxu1 %v1063_v21  ;;  %s228_s3 = sshrl.u32 %s227_s6, 16  ;;  %v1265_v17 = vadd.s32 %v1223_v47, %v273_v9  ;;  %v278_v9 = vmul.u32 2654435761, %v243_v55  ;;  %s683_s16 = smul.u32 2221713035, %s682_s15 }
  0x23   :  { %1003 = vmatprep.mubr.bf16.mxu0 %v38_v22  ;;  %s229_s7 = sxor.u32 %s228_s3, %s227_s6  ;;  %v241_v22 = vadd.s32 80, %v1217_v41  ;;  %v1276_v43 = vadd.s32 %v1223_v47, %v274_v31  ;;  %v1285_v50 = vadd.s32 %v1223_v47, %v277_v36  ;;  %p1067_p0 = scmp.ne.s32.totalorder %s901_s19, %s1066_s20 }
  0x24   :  { %v1231_v53 = vstv %s229_s7  ;;  %s684_s17 = sshrl.u32 %s683_s16, 16  ;;  %p1072_p2 = scmp.lt.s32.totalorder %s1066_s20, %s1066_s20 }
  0x25   :  { %1026 = vmatpush3.bf16.msra.mxu1 %v1063_v21  ;;  %v300_v59 = vadd.s32 %v1231_v53, %v1226_v51  ;;  %v301_v60 = vadd.s32 %v1231_v53, %v1229_v52  ;;  %v302_v61 = vadd.s32 %v1231_v53, %v1234_v54  ;;  %v303_v0 = vadd.s32 %v1231_v53, %v1239_v57  ;;  %s685_s18 = sxor.u32 %s684_s17, %s683_s16 }
  0x26   :  { %1027 = vmatprep.subr.bf16.mxu1 %v1064_v38  ;;  %v304_v14 = vadd.s32 %v1231_v53, %v1252_v6  ;;  %v305_v15 = vadd.s32 %v1231_v53, %v1255_v7  ;;  %v306_v18 = vadd.s32 %v1231_v53, %v1258_v10  ;;  %v240_v21 = vadd.s32 72, %v1217_v41  ;;  %p1073_p3 = por %p1072_p2, %p1071_p1 }
  0x27   :  { %v316_v3 = vshrl.u32 %v300_v59, 16  ;;  %v317_v4 = vshrl.u32 %v301_v60, 16  ;;  %v318_v5 = vshrl.u32 %v302_v61, 16  ;;  %v319_v8 = vshrl.u32 %v303_v0, 16 }
  0x28   :  { %v320_v26 = vshrl.u32 %v304_v14, 16  ;;  %v307_v29 = vadd.s32 %v1231_v53, %v1265_v17  ;;  %v322_v30 = vshrl.u32 %v306_v18, 16  ;;  %v308_v1 = vadd.s32 %v1231_v53, %v1276_v43  ;;  %p1074_p4 = pnand %p1073_p3, %p1067_p0 }
  0x29   :  { %1028 = vmatpush3.bf16.msra.mxu1 %v1064_v38  ;;  %v332_v11 = vxor.u32 %v316_v3, %v300_v59  ;;  %v333_v12 = vxor.u32 %v317_v4, %v301_v60  ;;  %v334_v13 = vxor.u32 %v318_v5, %v302_v61  ;;  %v335_v16 = vxor.u32 %v319_v8, %v303_v0 }
  0x2a   :  { %1004 = vmatmul.mubr.bf16.gmra.mrb[4].mxu0 %v39_v27  ;;  %1029 = vmatprep.subr.bf16.mxu1 %v1065_v39  ;;  %v321_v27 = vshrl.u32 %v305_v15, 16  ;;  %v323_v40 = vshrl.u32 %v307_v29, 16  ;;  %v338_v42 = vxor.u32 %v322_v30, %v306_v18  ;;  %v245_v60 = vadd.s32 112, %v1217_v41 }
  0x2b   :  { %1007 = vmatprep.mubr.bf16.mxu0 %v40_v28  ;;  %v348_v20 = vmul.u32 2146121005, %v332_v11  ;;  %v349_v23 = vmul.u32 2146121005, %v333_v12  ;;  %v246_v61 = vadd.s32 120, %v1217_v41  ;;  %v311_v8 = vadd.s32 %v1231_v53, %v1285_v50 }
  0x2c   :  { %v350_v25 = vmul.u32 2146121005, %v334_v13  ;;  %v351_v28 = vmul.u32 2146121005, %v335_v16  ;;  %v337_v38 = vxor.u32 %v321_v27, %v305_v15  ;;  %v339_v63 = vxor.u32 %v323_v40, %v307_v29 }
  0x2d   :  { %1030 = vmatpush3.bf16.msra.mxu1 %v1065_v39  ;;  %v364_v32 = vshrl.u32 %v348_v20, 15  ;;  %v365_v35 = vshrl.u32 %v349_v23, 15  ;;  %v354_v0 = vmul.u32 2146121005, %v338_v42  ;;  %v279_v11 = vmul.u32 2654435761, %v244_v56 }
  0x2e   :  { %v366_v39 = vshrl.u32 %v350_v25, 15  ;;  %v367_v45 = vshrl.u32 %v351_v28, 15  ;;  %v353_v59 = vmul.u32 2146121005, %v337_v38  ;;  %v280_v13 = vmul.u32 2654435761, %v245_v60 }
  0x2f   :  { %v380_v44 = vxor.u32 %v364_v32, %v348_v20  ;;  %v381_v49 = vxor.u32 %v365_v35, %v349_v23  ;;  %v355_v16 = vmul.u32 2146121005, %v339_v63  ;;  %v370_v18 = vshrl.u32 %v354_v0, 15 }
  0x30   :  { %v382_v62 = vxor.u32 %v366_v39, %v350_v25  ;;  %v383_v3 = vxor.u32 %v367_v45, %v351_v28  ;;  %v369_v12 = vshrl.u32 %v353_v59, 15  ;;  %v324_v19 = vshrl.u32 %v308_v1, 16 }
  0x31   :  { %v396_v2 = vmul.u32 2221713035, %v380_v44  ;;  %v397_v15 = vmul.u32 2221713035, %v381_v49  ;;  %v327_v25 = vshrl.u32 %v311_v8, 16  ;;  %v1303_v27 = vadd.s32 %v1223_v47, %v279_v11 }
  0x32   :  { %1008 = vmatmul.mubr.bf16.gmra.mrb[8].mxu0 %v41_v33  ;;  %v275_v33 = vmul.u32 2654435761, %v240_v21  ;;  %v398_v20 = vmul.u32 2221713035, %v382_v62  ;;  %v385_v29 = vxor.u32 %v369_v12, %v353_v59  ;;  %v1306_v30 = vadd.s32 %v1223_v47, %v280_v13 }
  0x33   :  { %1011 = vmatprep.mubr.bf16.mxu0 %v42_v34  ;;  %v276_v34 = vmul.u32 2654435761, %v241_v22  ;;  %v399_v21 = vmul.u32 2221713035, %v383_v3  ;;  %v412_v24 = vshrl.u32 %v396_v2, 16  ;;  %v413_v32 = vshrl.u32 %v397_v15, 16 }
  0x34   :  { %v1279_v46 = vadd.s32 %v1223_v47, %v275_v33  ;;  %v371_v33 = vshrl.u32 %v355_v16, 15  ;;  %v340_v35 = vxor.u32 %v324_v19, %v308_v1  ;;  %v414_v36 = vshrl.u32 %v398_v20, 16 }
  0x35   :  { %v1282_v48 = vadd.s32 %v1223_v47, %v276_v34  ;;  %v386_v34 = vxor.u32 %v370_v18, %v354_v0  ;;  %v1311_v40 = vxor.u32 %v412_v24, %v396_v2  ;;  %v343_v42 = vxor.u32 %v327_v25, %v311_v8 }
  0x36   :  { %v309_v4 = vadd.s32 %v1231_v53, %v1279_v46  ;;  %v313_v45 = vadd.s32 %v1231_v53, %v1303_v27  ;;  %v314_v55 = vadd.s32 %v1231_v53, %v1306_v30  ;;  %v387_v59 = vxor.u32 %v371_v33, %v355_v16 }
  0x37   :  { %v310_v5 = vadd.s32 %v1231_v53, %v1282_v48  ;;  %v402_v60 = vmul.u32 2221713035, %v386_v34  ;;  %v430_v62 = vxor.u32 %v414_v36, %v398_v20  ;;  %v359_v2 = vmul.u32 2146121005, %v343_v42 }
  0x38   :  { %v325_v22 = vshrl.u32 %v309_v4, 16  ;;  %vm444_vm0 = vcmp.lt.u32.totalorder %v1311_v40, 2147483648  ;;  %v330_v8 = vshrl.u32 %v314_v55, 16 }
  0x39   :  { %v326_v23 = vshrl.u32 %v310_v5, 16  ;;  %vm446_vm2 = vcmp.lt.u32.totalorder %v430_v62, 2147483648  ;;  %v418_v12 = vshrl.u32 %v402_v60, 16  ;;  %v375_v16 = vshrl.u32 %v359_v2, 15 }
  0x3a   :  { %1012 = vmatmul.mubr.bf16.gmra.mrb[12].mxu0 %v43_v37  ;;  %v336_v37 = vxor.u32 %v320_v26, %v304_v14  ;;  %v281_v14 = vmul.u32 2654435761, %v246_v61  ;;  %v1300_v26 = vadd.s32 %v1223_v47, %v278_v9  ;;  %v341_v38 = vxor.u32 %v325_v22, %v309_v4 }
  0x3b   :  { %v342_v39 = vxor.u32 %v326_v23, %v310_v5  ;;  %v356_v61 = vmul.u32 2146121005, %v340_v35  ;;  %v329_v4 = vshrl.u32 %v313_v45, 16  ;;  %v346_v23 = vxor.u32 %v330_v8, %v314_v55 }
  0x3c   :  { %v352_v58 = vmul.u32 2146121005, %v336_v37  ;;  %v1309_v31 = vadd.s32 %v1223_v47, %v281_v14  ;;  %v415_v37 = vshrl.u32 %v399_v21, 16  ;;  %v312_v44 = vadd.s32 %v1231_v53, %v1300_v26 }
  0x3d   :  { %v401_v47 = vmul.u32 2221713035, %v385_v29  ;;  %v357_v63 = vmul.u32 2146121005, %v341_v38  ;;  %v345_v19 = vxor.u32 %v329_v4, %v313_v45  ;;  %v434_v36 = vxor.u32 %v418_v12, %v402_v60 }
  0x3e   :  { %v368_v41 = vshrl.u32 %v352_v58, 15  ;;  %v315_v56 = vadd.s32 %v1231_v53, %v1309_v31  ;;  %v358_v0 = vmul.u32 2146121005, %v342_v39  ;;  %v431_v1 = vxor.u32 %v415_v37, %v399_v21 }
  0x3f   :  { %v328_v3 = vshrl.u32 %v312_v44, 16  ;;  %v417_v11 = vshrl.u32 %v401_v47, 16  ;;  %v372_v53 = vshrl.u32 %v356_v61, 15  ;;  %v373_v13 = vshrl.u32 %v357_v63, 15 }
  0x40   :  { %v384_v28 = vxor.u32 %v368_v41, %v352_v58  ;;  %v429_v58 = vxor.u32 %v413_v32, %v397_v15  ;;  %v331_v9 = vshrl.u32 %v315_v56, 16  ;;  %v403_v41 = vmul.u32 2221713035, %v387_v59 }
  0x41   :  { %v374_v14 = vshrl.u32 %v358_v0, 15  ;;  %vm447_vm3 = vcmp.lt.u32.totalorder %v431_v1, 2147483648  ;;  %v344_v18 = vxor.u32 %v328_v3, %v312_v44  ;;  %v433_v29 = vxor.u32 %v417_v11, %v401_v47 }
  0x42   :  { %v400_v49 = vmul.u32 2221713035, %v384_v28  ;;  %vm445_vm1 = vcmp.lt.u32.totalorder %v429_v58, 2147483648  ;;  %v347_v24 = vxor.u32 %v331_v9, %v315_v56  ;;  %v419_v32 = vshrl.u32 %v403_v41, 16  ;;  %vm1333_vm5 = vmpackc.low %vm447_vm3, %vm446_vm2 }
  0x43   :  { %v388_v33 = vxor.u32 %v372_v53, %v356_v61  ;;  %v389_v37 = vxor.u32 %v373_v13, %v357_v63  ;;  %v390_v38 = vxor.u32 %v374_v14, %v358_v0  ;;  %v391_v42 = vxor.u32 %v375_v16, %v359_v2  ;;  %vm1327_vm4 = vmpackc.low %vm445_vm1, %vm444_vm0 }
  0x44   :  { %v416_v5 = vshrl.u32 %v400_v49, 16  ;;  %v360_v44 = vmul.u32 2146121005, %v344_v18  ;;  %v361_v45 = vmul.u32 2146121005, %v345_v19  ;;  %vm449_vm7 = vcmp.lt.u32.totalorder %v433_v29, 2147483648 }
  0x45   :  { %v363_v4 = vmul.u32 2146121005, %v347_v24  ;;  %v404_v8 = vmul.u32 2221713035, %v388_v33  ;;  %vm450_vm8 = vcmp.lt.u32.totalorder %v434_v36, 2147483648 }
  0x46   :  { %v1322_v22 = vxor.u32 %v416_v5, %v400_v49  ;;  %v362_v49 = vmul.u32 2146121005, %v346_v23  ;;  %v435_v5 = vxor.u32 %v419_v32, %v403_v41  ;;  %v405_v61 = vmul.u32 2221713035, %v389_v37 }
  0x47   :  { %v406_v63 = vmul.u32 2221713035, %v390_v38  ;;  %v407_v11 = vmul.u32 2221713035, %v391_v42  ;;  %v376_v41 = vshrl.u32 %v360_v44, 15  ;;  %v377_v53 = vshrl.u32 %v361_v45, 15 }
  0x48   :  { %vm448_vm6 = vcmp.lt.u32.totalorder %v1322_v22, 2147483648  ;;  %v378_v58 = vshrl.u32 %v362_v49, 15  ;;  %v379_v13 = vshrl.u32 %v363_v4, 15  ;;  %vm451_vm9 = vcmp.lt.u32.totalorder %v435_v5, 2147483648 }
  0x49   :  { %v420_v16 = vshrl.u32 %v404_v8, 16  ;;  %v421_v18 = vshrl.u32 %v405_v61, 16  ;;  %v422_v19 = vshrl.u32 %v406_v63, 16  ;;  %v392_v23 = vxor.u32 %v376_v41, %v360_v44  ;;  %vm1345_vm10 = vmpackc.low %vm449_vm7, %vm448_vm6 }
  0x4a   :  { %v393_v24 = vxor.u32 %v377_v53, %v361_v45  ;;  %v394_v32 = vxor.u32 %v378_v58, %v362_v49  ;;  %v395_v33 = vxor.u32 %v379_v13, %v363_v4  ;;  %vm936_vm11 = vmpackc.low %vm451_vm9, %vm450_vm8 }
  0x4b   :  { %v437_v42 = vxor.u32 %v421_v18, %v405_v61  ;;  %v408_v49 = vmul.u32 2221713035, %v392_v23 }
  0x4c   :  { %v409_v4 = vmul.u32 2221713035, %v393_v24  ;;  %v411_v22 = vmul.u32 2221713035, %v395_v33 }
  0x4d   :  { %vm453_vm13 = vcmp.lt.u32.totalorder %v437_v42, 2147483648  ;;  %v424_v5 = vshrl.u32 %v408_v49, 16 }
  0x4f   :  { %v440_v13 = vxor.u32 %v424_v5, %v408_v49 }
  0x51   :  { %vm456_vm2 = vcmp.lt.u32.totalorder %v440_v13, 2147483648 }
  0xf5   :  { %v1001_v15 = vpop.f32.mrb[0].mxu0 }
  0xf6   :  { %v207_v20 = vmax.f32 %v1001_v15, 0.0  ;;  %v142_v21 = vpop.f32.mrb[1].mxu0 }
  0xf7   :  { %v205_v25 = vmax.f32 %v142_v21, 0.0  ;;  %v1002_v28 = vpop.f32.mrb[2].mxu0  ;;  %v423_v21 = vshrl.u32 %v407_v11, 16 }
  0xf8   :  { %v208_v34 = vmax.f32 %v1002_v28, 0.0  ;;  %v145_v35 = vpop.f32.mrb[3].mxu0  ;;  %v462_v59 = vadd.f32 %v207_v20, %v207_v20 }
  0xf9   :  { %v206_v39 = vmax.f32 %v145_v35, 0.0  ;;  %v460_v55 = vadd.f32 %v205_v25, %v205_v25  ;;  %v439_v45 = vxor.u32 %v423_v21, %v407_v11  ;;  %v427_v11 = vshrl.u32 %v411_v22, 16 }
  0xfa   :  { %v463_v3 = vadd.f32 %v208_v34, %v208_v34 }
  0xfb   :  { %v461_v56 = vadd.f32 %v206_v39, %v206_v39  ;;  %v436_v39 = vxor.u32 %v420_v16, %v404_v8  ;;  %vm455_vm15 = vcmp.lt.u32.totalorder %v439_v45, 2147483648  ;;  %v443_v16 = vxor.u32 %v427_v11, %v411_v22 }
  0xfc   :  { %v931_v47 = vpack.c.bf16 %v463_v3, %v462_v59  ;;  %v438_v59 = vxor.u32 %v422_v19, %v406_v63  ;;  %v425_v63 = vshrl.u32 %v409_v4, 16 }
  0xfd   :  { %v1005_v0 = vpop.f32.mrb[4].mxu0  ;;  %v928_v2 = vpack.c.bf16 %v461_v56, %v460_v55  ;;  %vm452_vm12 = vcmp.lt.u32.totalorder %v436_v39, 2147483648 }
  0xfe   :  { %v211_v12 = vmax.f32 %v1005_v0, 0.0  ;;  %v158_v40 = vpop.f32.mrb[5].mxu0  ;;  %vm454_vm14 = vcmp.lt.u32.totalorder %v438_v59, 2147483648  ;;  %vm939_vm0 = vmpackc.low %vm453_vm13, %vm452_vm12 }
  0xff   :  { %v209_v14 = vmax.f32 %v158_v40, 0.0  ;;  %v1006_v15 = vpop.f32.mrb[6].mxu0  ;;  %1031 = vmatprep.mubr.msk.bf16.mxu1 %vm1327_vm4, %v928_v2  ;;  %vm942_vm1 = vmpackc.low %vm455_vm15, %vm454_vm14 }
 0x100   :  { %v212_v62 = vmax.f32 %v1006_v15, 0.0  ;;  %v161_v1 = vpop.f32.mrb[7].mxu0  ;;  %1032 = vmatmul.mubr.msk.bf16.vlgmr.msra.gmra.mrb[0].mxu1 %vm1333_vm5, %v931_v47  ;;  %v466_v25 = vadd.f32 %v211_v12, %v211_v12  ;;  %v410_v47 = vmul.u32 2221713035, %v394_v32  ;;  %vm459_vm5 = vcmp.lt.u32.totalorder %v443_v16, 2147483648 }
 0x101   :  { %v210_v20 = vmax.f32 %v161_v1, 0.0  ;;  %v464_v34 = vadd.f32 %v209_v14, %v209_v14  ;;  %v441_v14 = vxor.u32 %v425_v63, %v409_v4 }
 0x102   :  { %v467_v28 = vadd.f32 %v212_v62, %v212_v62  ;;  %v426_v9 = vshrl.u32 %v410_v47, 16 }
 0x103   :  { %v465_v35 = vadd.f32 %v210_v20, %v210_v20  ;;  %vm457_vm3 = vcmp.lt.u32.totalorder %v441_v14, 2147483648 }
 0x104   :  { %v937_v37 = vpack.c.bf16 %v467_v28, %v466_v25  ;;  %v442_v1 = vxor.u32 %v426_v9, %v410_v47  ;;  %vm945_vm6 = vmpackc.low %vm457_vm3, %vm456_vm2 }
 0x105   :  { %v934_v3 = vpack.c.bf16 %v465_v35, %v464_v34  ;;  %v1009_v44 = vpop.f32.mrb[8].mxu0  ;;  %v1357_v35 = vstv %s685_s18 }
 0x106   :  { %v215_v55 = vmax.f32 %v1009_v44, 0.0  ;;  %v174_v56 = vpop.f32.mrb[9].mxu0  ;;  %vm458_vm4 = vcmp.lt.u32.totalorder %v442_v1, 2147483648  ;;  %v687_v38 = vadd.s32 %v1357_v35, %v1226_v51  ;;  %v690_v39 = vadd.s32 %v1357_v35, %v1239_v57 }
 0x107   :  { %v213_v29 = vmax.f32 %v174_v56, 0.0  ;;  %v1010_v60 = vpop.f32.mrb[10].mxu0  ;;  %1035 = vmatprep.mubr.msk.bf16.mxu1 %vm1345_vm10, %v934_v3  ;;  %vm948_vm7 = vmpackc.low %vm459_vm5, %vm458_vm4  ;;  %v688_v42 = vadd.s32 %v1357_v35, %v1229_v52  ;;  %v693_v49 = vadd.s32 %v1357_v35, %v1258_v10  ;;  %v691_v4 = vadd.s32 %v1357_v35, %v1252_v6 }
 0x108   :  { %v216_v8 = vmax.f32 %v1010_v60, 0.0  ;;  %v177_v61 = vpop.f32.mrb[11].mxu0  ;;  %1036 = vmatmul.mubr.msk.bf16.gmra.mrb[4].mxu1 %vm936_vm11, %v937_v37  ;;  %v470_v0 = vadd.f32 %v215_v55, %v215_v55  ;;  %v689_v37 = vadd.s32 %v1357_v35, %v1234_v54  ;;  %v703_v3 = vshrl.u32 %v687_v38, 16 }
 0x109   :  { %v214_v36 = vmax.f32 %v177_v61, 0.0  ;;  %v468_v41 = vadd.f32 %v213_v29, %v213_v29  ;;  %v706_v44 = vshrl.u32 %v690_v39, 16  ;;  %v704_v45 = vshrl.u32 %v688_v42, 16 }
 0x10a   :  { %v471_v2 = vadd.f32 %v216_v8, %v216_v8  ;;  %v705_v59 = vshrl.u32 %v689_v37, 16  ;;  %v694_v51 = vadd.s32 %v1357_v35, %v1265_v17  ;;  %v719_v55 = vxor.u32 %v703_v3, %v687_v38 }
 0x10b   :  { %v469_v53 = vadd.f32 %v214_v36, %v214_v36  ;;  %v692_v57 = vadd.s32 %v1357_v35, %v1255_v7  ;;  %v722_v56 = vxor.u32 %v706_v44, %v690_v39  ;;  %v720_v52 = vxor.u32 %v704_v45, %v688_v42 }
 0x10c   :  { %v943_v12 = vpack.c.bf16 %v471_v2, %v470_v0  ;;  %v721_v54 = vxor.u32 %v705_v59, %v689_v37  ;;  %v709_v47 = vshrl.u32 %v693_v49, 16  ;;  %v707_v22 = vshrl.u32 %v691_v4, 16 }
 0x10d   :  { %v940_v40 = vpack.c.bf16 %v469_v53, %v468_v41  ;;  %v1013_v58 = vpop.f32.mrb[12].mxu0  ;;  %v710_v60 = vshrl.u32 %v694_v51, 16  ;;  %v735_v8 = vmul.u32 2146121005, %v719_v55  ;;  %v708_v61 = vshrl.u32 %v692_v57, 16 }
 0x10e   :  { %v219_v15 = vmax.f32 %v1013_v58, 0.0  ;;  %v190_v62 = vpop.f32.mrb[13].mxu0  ;;  %v737_v29 = vmul.u32 2146121005, %v721_v54  ;;  %v738_v10 = vmul.u32 2146121005, %v722_v56  ;;  %v725_v5 = vxor.u32 %v709_v47, %v693_v49 }
 0x10f   :  { %v217_v18 = vmax.f32 %v190_v62, 0.0  ;;  %v1014_v19 = vpop.f32.mrb[14].mxu0  ;;  %1039 = vmatprep.mubr.msk.bf16.mxu1 %vm939_vm0, %v940_v40  ;;  %v736_v36 = vmul.u32 2146121005, %v720_v52  ;;  %v723_v6 = vxor.u32 %v707_v22, %v691_v4  ;;  %v726_v0 = vxor.u32 %v710_v60, %v694_v51 }
 0x110   :  { %v220_v20 = vmax.f32 %v1014_v19, 0.0  ;;  %v193_v21 = vpop.f32.mrb[15].mxu0  ;;  %1040 = vmatmul.mubr.msk.bf16.gmra.mrb[8].mxu1 %vm942_vm1, %v943_v12  ;;  %v474_v24 = vadd.f32 %v219_v15, %v219_v15  ;;  %v753_v63 = vshrl.u32 %v737_v29, 15  ;;  %v751_v2 = vshrl.u32 %v735_v8, 15 }
 0x111   :  { %v218_v23 = vmax.f32 %v193_v21, 0.0  ;;  %v472_v28 = vadd.f32 %v217_v18, %v217_v18  ;;  %v724_v17 = vxor.u32 %v708_v61, %v692_v57  ;;  %v754_v9 = vshrl.u32 %v738_v10, 15 }
 0x112   :  { %v475_v25 = vadd.f32 %v220_v20, %v220_v20  ;;  %v752_v11 = vshrl.u32 %v736_v36, 15  ;;  %v741_v41 = vmul.u32 2146121005, %v725_v5  ;;  %v739_v7 = vmul.u32 2146121005, %v723_v6 }
 0x113   :  { %v473_v32 = vadd.f32 %v218_v23, %v218_v23  ;;  %v769_v53 = vxor.u32 %v753_v63, %v737_v29  ;;  %v742_v12 = vmul.u32 2146121005, %v726_v0  ;;  %v767_v40 = vxor.u32 %v751_v2, %v735_v8 }
 0x114   :  { %v949_v33 = vpack.c.bf16 %v475_v25, %v474_v24  ;;  %v740_v58 = vmul.u32 2146121005, %v724_v17  ;;  %v697_v13 = vadd.s32 %v1357_v35, %v1282_v48  ;;  %v770_v14 = vxor.u32 %v754_v9, %v738_v10 }
 0x115   :  { %v946_v34 = vpack.c.bf16 %v473_v32, %v472_v28  ;;  %v768_v15 = vxor.u32 %v752_v11, %v736_v36  ;;  %v695_v62 = vadd.s32 %v1357_v35, %v1276_v43  ;;  %v757_v1 = vshrl.u32 %v741_v41, 15 }
 0x116   :  { %v755_v16 = vshrl.u32 %v739_v7, 15  ;;  %v698_v18 = vadd.s32 %v1357_v35, %v1285_v50  ;;  %v785_v19 = vmul.u32 2221713035, %v769_v53  ;;  %v758_v20 = vshrl.u32 %v742_v12, 15 }
 0x117   :  { %1043 = vmatprep.mubr.msk.bf16.mxu1 %vm945_vm6, %v946_v34  ;;  %v696_v21 = vadd.s32 %v1357_v35, %v1279_v46  ;;  %v783_v23 = vmul.u32 2221713035, %v767_v40  ;;  %v756_v24 = vshrl.u32 %v740_v58, 15  ;;  %v713_v25 = vshrl.u32 %v697_v13, 16 }
 0x118   :  { %1044 = vmatmul.mubr.msk.bf16.gmra.mrb[12].mxu1 %vm948_vm7, %v949_v33  ;;  %v786_v28 = vmul.u32 2221713035, %v770_v14  ;;  %v784_v48 = vmul.u32 2221713035, %v768_v15  ;;  %v711_v32 = vshrl.u32 %v695_v62, 16  ;;  %v773_v33 = vxor.u32 %v757_v1, %v741_v41 }
 0x119   :  { %v771_v34 = vxor.u32 %v755_v16, %v739_v7  ;;  %v714_v37 = vshrl.u32 %v698_v18, 16  ;;  %v801_v43 = vshrl.u32 %v785_v19, 16  ;;  %v774_v38 = vxor.u32 %v758_v20, %v742_v12 }
 0x11a   :  { %v712_v39 = vshrl.u32 %v696_v21, 16  ;;  %v799_v42 = vshrl.u32 %v783_v23, 16  ;;  %v772_v59 = vxor.u32 %v756_v24, %v740_v58  ;;  %v729_v50 = vxor.u32 %v713_v25, %v697_v13 }
 0x11b   :  { %v701_v3 = vadd.s32 %v1357_v35, %v1306_v30  ;;  %v802_v44 = vshrl.u32 %v786_v28, 16  ;;  %v800_v46 = vshrl.u32 %v784_v48, 16  ;;  %v727_v45 = vxor.u32 %v711_v32, %v695_v62 }
 0x11c   :  { %v699_v49 = vadd.s32 %v1357_v35, %v1300_v26  ;;  %v789_v4 = vmul.u32 2221713035, %v773_v33  ;;  %v787_v54 = vmul.u32 2221713035, %v771_v34  ;;  %v730_v51 = vxor.u32 %v714_v37, %v698_v18 }
 0x11d   :  { %v702_v55 = vadd.s32 %v1357_v35, %v1309_v31  ;;  %v817_v57 = vxor.u32 %v801_v43, %v785_v19  ;;  %v790_v56 = vmul.u32 2221713035, %v774_v38  ;;  %v728_v52 = vxor.u32 %v712_v39, %v696_v21 }
 0x11e   :  { %v700_v47 = vadd.s32 %v1357_v35, %v1303_v27  ;;  %v815_v22 = vxor.u32 %v799_v42, %v783_v23  ;;  %v788_v30 = vmul.u32 2221713035, %v772_v59  ;;  %v745_v29 = vmul.u32 2146121005, %v729_v50 }
 0x11f   :  { %v717_v60 = vshrl.u32 %v701_v3, 16  ;;  %v818_v8 = vxor.u32 %v802_v44, %v786_v28  ;;  %v816_v61 = vxor.u32 %v800_v46, %v784_v48  ;;  %v743_v10 = vmul.u32 2146121005, %v727_v45 }
 0x120   :  { %v715_v26 = vshrl.u32 %v699_v49, 16  ;;  %v805_v36 = vshrl.u32 %v789_v4, 16  ;;  %v803_v5 = vshrl.u32 %v787_v54, 16  ;;  %v746_v6 = vmul.u32 2146121005, %v730_v51 }
 0x121   :  { %v718_v63 = vshrl.u32 %v702_v55, 16  ;;  %vm833_vm8 = vcmp.lt.u32.totalorder %v817_v57, 2147483648  ;;  %v806_v31 = vshrl.u32 %v790_v56, 16  ;;  %v744_v0 = vmul.u32 2146121005, %v728_v52 }
 0x122   :  { %v716_v2 = vshrl.u32 %v700_v47, 16  ;;  %vm831_vm9 = vcmp.lt.u32.totalorder %v815_v22, 2147483648  ;;  %v804_v17 = vshrl.u32 %v788_v30, 16  ;;  %v761_v9 = vshrl.u32 %v745_v29, 15 }
 0x123   :  { %v733_v27 = vxor.u32 %v717_v60, %v701_v3  ;;  %vm834_vm10 = vcmp.lt.u32.totalorder %v818_v8, 2147483648  ;;  %vm832_vm11 = vcmp.lt.u32.totalorder %v816_v61, 2147483648  ;;  %v759_v35 = vshrl.u32 %v743_v10, 15 }
 0x124   :  { %v731_v11 = vxor.u32 %v715_v26, %v699_v49  ;;  %v1391_v7 = vxor.u32 %v805_v36, %v789_v4  ;;  %v1393_v53 = vxor.u32 %v803_v5, %v787_v54  ;;  %v762_v12 = vshrl.u32 %v746_v6, 15 }
 0x125   :  { %v734_v40 = vxor.u32 %v718_v63, %v702_v55  ;;  %v1395_v14 = vxor.u32 %v806_v31, %v790_v56  ;;  %v760_v15 = vshrl.u32 %v744_v0, 15  ;;  %v732_v62 = vxor.u32 %v716_v2, %v700_v47 }
 0x126   :  { %v1397_v18 = vxor.u32 %v804_v17, %v788_v30  ;;  %v777_v19 = vxor.u32 %v761_v9, %v745_v29  ;;  %v749_v20 = vmul.u32 2146121005, %v733_v27  ;;  %v775_v25 = vxor.u32 %v759_v35, %v743_v10 }
 0x127   :  { %v747_v28 = vmul.u32 2146121005, %v731_v11  ;;  %v778_v33 = vxor.u32 %v762_v12, %v746_v6  ;;  %v750_v34 = vmul.u32 2146121005, %v734_v40  ;;  %v776_v38 = vxor.u32 %v760_v15, %v744_v0 }
 0x128   :  { %v748_v39 = vmul.u32 2146121005, %v732_v62  ;;  %v793_v50 = vmul.u32 2221713035, %v777_v19  ;;  %v765_v3 = vshrl.u32 %v749_v20, 15  ;;  %vm837_vm12 = vcmp.lt.u32.totalorder %v1391_v7, 2147483648 }
 0x129   :  { %v791_v46 = vmul.u32 2221713035, %v775_v25  ;;  %v763_v45 = vshrl.u32 %v747_v28, 15  ;;  %vm835_vm13 = vcmp.lt.u32.totalorder %v1393_v53, 2147483648  ;;  %v794_v54 = vmul.u32 2221713035, %v778_v33 }
 0x12a   :  { %v766_v51 = vshrl.u32 %v750_v34, 15  ;;  %vm838_vm14 = vcmp.lt.u32.totalorder %v1395_v14, 2147483648  ;;  %v792_v56 = vmul.u32 2221713035, %v776_v38  ;;  %v764_v52 = vshrl.u32 %v748_v39, 15 }
 0x12b   :  { %vm836_vm15 = vcmp.lt.u32.totalorder %v1397_v18, 2147483648  ;;  %v809_v30 = vshrl.u32 %v793_v50, 16  ;;  %v781_v29 = vxor.u32 %v765_v3, %v749_v20  ;;  %v807_v10 = vshrl.u32 %v791_v46, 16 }
 0x12c   :  { %v779_v26 = vxor.u32 %v763_v45, %v747_v28  ;;  %v810_v6 = vshrl.u32 %v794_v54, 16  ;;  %v782_v63 = vxor.u32 %v766_v51, %v750_v34  ;;  %v808_v2 = vshrl.u32 %v792_v56, 16 }
 0x12d   :  { %v780_v17 = vxor.u32 %v764_v52, %v748_v39  ;;  %v825_v35 = vxor.u32 %v809_v30, %v793_v50  ;;  %v797_v11 = vmul.u32 2221713035, %v781_v29  ;;  %v823_v12 = vxor.u32 %v807_v10, %v791_v46 }
 0x12e   :  { %v795_v40 = vmul.u32 2221713035, %v779_v26  ;;  %v798_v15 = vmul.u32 2221713035, %v782_v63 }
 0x12f   :  { %vm841_vm0 = vcmp.lt.u32.totalorder %v825_v35, 2147483648  ;;  %vm839_vm1 = vcmp.lt.u32.totalorder %v823_v12, 2147483648 }
 0x130   :  { %v811_v25 = vshrl.u32 %v795_v40, 16 }
 0x1d3   :  { %v1033_v41 = vpop.f32.mrb[0].mxu1 }
 0x1d4   :  { %v663_v58 = vmax.f32 %v1033_v41, 0.0  ;;  %v598_v13 = vpop.f32.mrb[1].mxu1 }
 0x1d5   :  { %v661_v1 = vmax.f32 %v598_v13, 0.0  ;;  %v1034_v16 = vpop.f32.mrb[2].mxu1  ;;  %v826_v13 = vxor.u32 %v810_v6, %v794_v54 }
 0x1d6   :  { %v849_v21 = vadd.f32 %v663_v58, %v663_v58  ;;  %v664_v23 = vmax.f32 %v1034_v16, 0.0  ;;  %v601_v24 = vpop.f32.mrb[3].mxu1  ;;  %v796_v16 = vmul.u32 2221713035, %v780_v17 }
 0x1d7   :  { %v847_v48 = vadd.f32 %v661_v1, %v661_v1  ;;  %v662_v32 = vmax.f32 %v601_v24, 0.0  ;;  %v824_v1 = vxor.u32 %v808_v2, %v792_v56  ;;  %vm842_vm2 = vcmp.lt.u32.totalorder %v826_v13, 2147483648 }
 0x1d8   :  { %v865_v37 = vsel %vm833_vm8, %v849_v21, 0.0  ;;  %v850_v43 = vadd.f32 %v664_v23, %v664_v23  ;;  %v813_v21 = vshrl.u32 %v797_v11, 16  ;;  %v812_v34 = vshrl.u32 %v796_v16, 16 }
 0x1d9   :  { %881 = vst [vmem:[#allocation4 + $0x10] sm:$0xff] %v865_v37  ;;  %v863_v42 = vsel %vm831_vm9, %v847_v48, 0.0  ;;  %v848_v59 = vadd.f32 %v662_v32, %v662_v32  ;;  %v814_v48 = vshrl.u32 %v798_v15, 16  ;;  %vm840_vm3 = vcmp.lt.u32.totalorder %v824_v1, 2147483648 }
 0x1da   :  { %879 = vst [vmem:[#allocation4] sm:$0xff] %v863_v42  ;;  %v866_v44 = vsel %vm834_vm10, %v850_v43, 0.0  ;;  %v829_v38 = vxor.u32 %v813_v21, %v797_v11  ;;  %v827_v42 = vxor.u32 %v811_v25, %v795_v40  ;;  %v828_v45 = vxor.u32 %v812_v34, %v796_v16 }
 0x1db   :  { %882 = vst [vmem:[#allocation4 + $0x18] sm:$0xff] %v866_v44  ;;  %v864_v49 = vsel %vm832_vm11, %v848_v59, 0.0  ;;  %v1037_v4 = vpop.f32.mrb[4].mxu1  ;;  %v830_v3 = vxor.u32 %v814_v48, %v798_v15 }
 0x1dc   :  { %880 = vst [vmem:[#allocation4 + $0x8] sm:$0xff] %v864_v49  ;;  %v667_v55 = vmax.f32 %v1037_v4, 0.0  ;;  %v614_v57 = vpop.f32.mrb[5].mxu1  ;;  %vm845_vm4 = vcmp.lt.u32.totalorder %v829_v38, 2147483648  ;;  %vm843_vm5 = vcmp.lt.u32.totalorder %v827_v42, 2147483648  ;;  %vm844_vm7 = vcmp.lt.u32.totalorder %v828_v45, 2147483648 }
 0x1dd   :  { %v665_v47 = vmax.f32 %v614_v57, 0.0  ;;  %v1038_v22 = vpop.f32.mrb[6].mxu1  ;;  %vm846_vm6 = vcmp.lt.u32.totalorder %v830_v3, 2147483648 }
 0x1de   :  { %v853_v60 = vadd.f32 %v667_v55, %v667_v55  ;;  %v668_v8 = vmax.f32 %v1038_v22, 0.0  ;;  %v617_v61 = vpop.f32.mrb[7].mxu1 }
 0x1df   :  { %v851_v36 = vadd.f32 %v665_v47, %v665_v47  ;;  %v666_v5 = vmax.f32 %v617_v61, 0.0 }
 0x1e0   :  { %v869_v31 = vsel %vm837_vm12, %v853_v60, 0.0  ;;  %v854_v0 = vadd.f32 %v668_v8, %v668_v8 }
 0x1e1   :  { %885 = vst [vmem:[#allocation4 + $0x30] sm:$0xff] %v869_v31  ;;  %v867_v9 = vsel %vm835_vm13, %v851_v36, 0.0  ;;  %v852_v27 = vadd.f32 %v666_v5, %v666_v5 }
 0x1e2   :  { %883 = vst [vmem:[#allocation4 + $0x20] sm:$0xff] %v867_v9  ;;  %v870_v41 = vsel %vm838_vm14, %v854_v0, 0.0 }
 0x1e3   :  { %886 = vst [vmem:[#allocation4 + $0x38] sm:$0xff] %v870_v41  ;;  %v868_v7 = vsel %vm836_vm15, %v852_v27, 0.0  ;;  %v1041_v58 = vpop.f32.mrb[8].mxu1 }
 0x1e4   :  { %884 = vst [vmem:[#allocation4 + $0x28] sm:$0xff] %v868_v7  ;;  %v671_v62 = vmax.f32 %v1041_v58, 0.0  ;;  %v630_v53 = vpop.f32.mrb[9].mxu1 }
 0x1e5   :  { %v669_v19 = vmax.f32 %v630_v53, 0.0  ;;  %v1042_v20 = vpop.f32.mrb[10].mxu1 }
 0x1e6   :  { %v857_v14 = vadd.f32 %v671_v62, %v671_v62  ;;  %v672_v23 = vmax.f32 %v1042_v20, 0.0  ;;  %v633_v24 = vpop.f32.mrb[11].mxu1 }
 0x1e7   :  { %v855_v28 = vadd.f32 %v669_v19, %v669_v19  ;;  %v670_v18 = vmax.f32 %v633_v24, 0.0 }
 0x1e8   :  { %v873_v32 = vsel %vm841_vm0, %v857_v14, 0.0  ;;  %v858_v33 = vadd.f32 %v672_v23, %v672_v23 }
 0x1e9   :  { %889 = vst [vmem:[#allocation4 + $0x50] sm:$0xff] %v873_v32  ;;  %v871_v37 = vsel %vm839_vm1, %v855_v28, 0.0  ;;  %v856_v43 = vadd.f32 %v670_v18, %v670_v18 }
 0x1ea   :  { %887 = vst [vmem:[#allocation4 + $0x40] sm:$0xff] %v871_v37  ;;  %v874_v39 = vsel %vm842_vm2, %v858_v33, 0.0 }
 0x1eb   :  { %890 = vst [vmem:[#allocation4 + $0x58] sm:$0xff] %v874_v39  ;;  %v872_v59 = vsel %vm840_vm3, %v856_v43, 0.0  ;;  %v1045_v50 = vpop.f32.mrb[12].mxu1 }
 0x1ec   :  { %888 = vst [vmem:[#allocation4 + $0x48] sm:$0xff] %v872_v59  ;;  %v675_v44 = vmax.f32 %v1045_v50, 0.0  ;;  %v646_v46 = vpop.f32.mrb[13].mxu1 }
 0x1ed   :  { %v673_v49 = vmax.f32 %v646_v46, 0.0  ;;  %v1046_v4 = vpop.f32.mrb[14].mxu1 }
 0x1ee   :  { %v861_v54 = vadd.f32 %v675_v44, %v675_v44  ;;  %v676_v51 = vmax.f32 %v1046_v4, 0.0  ;;  %v649_v55 = vpop.f32.mrb[15].mxu1 }
 0x1ef   :  { %v859_v57 = vadd.f32 %v673_v49, %v673_v49  ;;  %v674_v56 = vmax.f32 %v649_v55, 0.0 }
 0x1f0   :  { %v877_v52 = vsel %vm845_vm4, %v861_v54, 0.0  ;;  %v862_v47 = vadd.f32 %v676_v51, %v676_v51 }
 0x1f1   :  { %893 = vst [vmem:[#allocation4 + $0x70] sm:$0xff] %v877_v52  ;;  %v875_v22 = vsel %vm843_vm5, %v859_v57, 0.0  ;;  %v860_v30 = vadd.f32 %v674_v56, %v674_v56 }
 0x1f2   :  { %891 = vst [vmem:[#allocation4 + $0x60] sm:$0xff] %v875_v22  ;;  %v878_v29 = vsel %vm846_vm6, %v862_v47, 0.0 }
 0x1f3   :  { %894 = vst [vmem:[#allocation4 + $0x78] sm:$0xff] %v878_v29  ;;  %v876_v60 = vsel %vm844_vm7, %v860_v30, 0.0 }
 0x1f4   :  { %892 = vst [vmem:[#allocation4 + $0x68] sm:$0xff] %v876_v60 }
 0x1f5   :  { %1077 = shalt.err (!%p1074_p4)
}
 0x1f6   :  { %s1078_s23 = scalar_lea.hbm %s1431_s4, 2048 }
 0x1f7   :  { %p1079_p5 = scmp.ne.s32.totalorder %s1431_s4, %s1078_s23  ;;  %p1082_p6 = scmp.lt.u32.totalorder %s1078_s23, %s1431_s4 }
 0x1f9   :  { %p1084_p7 = pnand %p1082_p6, %p1079_p5 }
 0x1fb   :  { %1087 = shalt.err (!%p1084_p7)
}
 0x1fc   :  { %s1091_s27 = smov 128   ;;  %s1092_s28 = smov 8  }
 0x1fd   :  { %906 = dma.vmem_to_hbm [thread:$0]  %s901_s19, 2048, %s1431_s4, [#allocation5], %s1091_s27, %s1091_s27, %s1092_s28  }
 0x1fe   :  { %1088 = dma.done.wait [#allocation5], 2048  }
 0x1ff   :  { %1089 = vsyncadd [#allocation5], 4294965248 }
 0x200   :  { %910 = vsyncpa [#allocation5], 1 }

</bundles_post_ra>
